<compile_context>
chip_gen: v5e
topology: v5e:2x2
jax: 0.10.0
libtpu: 0.0.40
codegen_flags: <defaults>
</compile_context>

<pallas_src>
import jax
import jax.numpy as jnp
from jax.experimental import pallas as pl
from jax.experimental.pallas import tpu as pltpu


def _se_kernel(x_ref, w1t_ref, b1_ref, w2t_ref, b2_ref, o_ref):
    # x_ref:   (Nb, HW, C)   block of batch elements, lane-dense channels
    # w1t_ref: (C, Cr)       fc1 weight, transposed for (Nb,C)@(C,Cr)
    # b1_ref:  (1, Cr)       fc1 bias, lane-dense row
    # w2t_ref: (Cr, C)       fc2 weight, transposed for (Nb,Cr)@(Cr,C)
    # b2_ref:  (1, C)        fc2 bias, lane-dense row
    # o_ref:   (Nb, HW, C)
    x = x_ref[...]

    # Squeeze: global average pool over spatial positions (sublane reduction).
    pooled = jnp.mean(x.astype(jnp.float32), axis=1)            # (Nb, C)

    # Excitation: batched FC1 + ReLU, FC2 + sigmoid. The batched formulation
    # fills the contraction dim (C) rather than running two (.,1) matmuls.
    h = jnp.dot(pooled, w1t_ref[...],
                preferred_element_type=jnp.float32) + b1_ref[...]   # (Nb, Cr)
    h = jnp.maximum(h, 0.0)
    s = jnp.dot(h, w2t_ref[...],
                preferred_element_type=jnp.float32) + b2_ref[...]   # (Nb, C)
    s = jax.nn.sigmoid(s)

    # Scale: broadcast per-channel gate across spatial positions (lane-dense).
    o_ref[...] = (x * s[:, None, :].astype(x.dtype)).astype(o_ref.dtype)


def _choose_block_batch(n, per_elem_bytes, target_bytes=2 * 1024 * 1024):
    """Largest divisor of n whose block stays around `target_bytes`."""
    nb = max(1, min(n, target_bytes // max(per_elem_bytes, 1)))
    while n % nb != 0:
        nb -= 1
    return nb


def se_module(x, w1, b1, w2, b2):
    """x: (N, C, H, W); w1: (Cr, C); b1: (Cr,); w2: (C, Cr); b2: (C,)."""
    N, C, H, W = x.shape
    Cr = w1.shape[0]
    HW = H * W
    itemsize = jnp.dtype(x.dtype).itemsize

    # Lane-dense layout: channels last.
    x_ln = x.transpose(0, 2, 3, 1).reshape(N, HW, C)       # (N, HW, C)
    w1_t = w1.T                                             # (C, Cr)
    w2_t = w2.T                                             # (Cr, C)
    b1_row = b1.reshape(1, Cr)
    b2_row = b2.reshape(1, C)

    # Multiple images per grid step -> multi-MB blocks, not overhead-bound.
    nb = _choose_block_batch(N, HW * C * itemsize)
    grid = (N // nb,)

    cost = pl.CostEstimate(
        flops=2 * N * C * HW + 4 * N * C * Cr,
        transcendentals=N * C,
        bytes_accessed=2 * N * C * HW * itemsize + (2 * C * Cr + C + Cr) * 4,
    )

    out_ln = pl.pallas_call(
        _se_kernel,
        out_shape=jax.ShapeDtypeStruct((N, HW, C), x.dtype),
        grid_spec=pltpu.PrefetchScalarGridSpec(
            num_scalar_prefetch=0,
            grid=grid,
            in_specs=[
                pl.BlockSpec((nb, HW, C), lambda n: (n, 0, 0)),
                pl.BlockSpec((C, Cr), lambda n: (0, 0)),
                pl.BlockSpec((1, Cr), lambda n: (0, 0)),
                pl.BlockSpec((Cr, C), lambda n: (0, 0)),
                pl.BlockSpec((1, C), lambda n: (0, 0)),
            ],
            out_specs=pl.BlockSpec((nb, HW, C), lambda n: (n, 0, 0)),
        ),
        compiler_params=pltpu.CompilerParams(
            dimension_semantics=("parallel",),
        ),
        cost_estimate=cost,
    )(x_ln, w1_t, b1_row, w2_t, b2_row)

    return out_ln.reshape(N, H, W, C).transpose(0, 3, 1, 2)


def se_module_ref(x, w1, b1, w2, b2):
    """Pure-JAX reference mirroring the PyTorch forward."""
    pooled = x.mean(axis=(2, 3), keepdims=True)              # (N, C, 1, 1)
    h = jnp.einsum("nchw,oc->nohw", pooled, w1) + b1[None, :, None, None]
    h = jnp.maximum(h, 0.0)
    s = jnp.einsum("nchw,oc->nohw", h, w2) + b2[None, :, None, None]
    s = jax.nn.sigmoid(s)
    return x * s


if __name__ == "__main__":
    # Small shapes consistent with SEModule(channels=16, reduction=4)
    N, C, H, W = 2, 16, 16, 16
    reduction = 4
    Cr = C // reduction

    key = jax.random.PRNGKey(0)
    kx, kw1, kb1, kw2, kb2 = jax.random.split(key, 5)

    x = jax.random.normal(kx, (N, C, H, W), dtype=jnp.float32)
    w1 = jax.random.normal(kw1, (Cr, C), dtype=jnp.float32) * 0.1
    b1 = jax.random.normal(kb1, (Cr,), dtype=jnp.float32) * 0.1
    w2 = jax.random.normal(kw2, (C, Cr), dtype=jnp.float32) * 0.1
    b2 = jax.random.normal(kb2, (C,), dtype=jnp.float32) * 0.1

    out = se_module(x, w1, b1, w2, b2)
    out = jax.block_until_ready(out)

    ref = se_module_ref(x, w1, b1, w2, b2)
    assert out.shape == (N, C, H, W)
    assert jnp.allclose(out, ref, atol=1e-5, rtol=1e-5), "mismatch vs reference"

    print("KERNEL_OK")
</pallas_src>

<mosaic_0001>
module attributes {stable_mosaic.version = 11 : i64} {
  func.func @_se_kernel(%arg0: i32, %arg1: memref<2x256x16xf32, #tpu.memory_space<vmem>>, %arg2: memref<16x4xf32, #tpu.memory_space<vmem>>, %arg3: memref<1x4xf32, #tpu.memory_space<vmem>>, %arg4: memref<4x16xf32, #tpu.memory_space<vmem>>, %arg5: memref<1x16xf32, #tpu.memory_space<vmem>>, %arg6: memref<2x256x16xf32, #tpu.memory_space<vmem>>) attributes {dimension_semantics = [#tpu.dimension_semantics<parallel>], iteration_bounds = array<i64: 1>, scalar_prefetch = 0 : i64, scratch_operands = 0 : i64, tpu.core_type = #tpu.core_type<tc>, window_params = [{transform_indices = @transform_0, window_bounds = array<i64: 2, 256, 16>}, {pipeline_mode = #tpu.pipeline_mode<synchronous>, transform_indices = @transform_1, window_bounds = array<i64: 16, 4>}, {pipeline_mode = #tpu.pipeline_mode<synchronous>, transform_indices = @transform_2, window_bounds = array<i64: 1, 4>}, {pipeline_mode = #tpu.pipeline_mode<synchronous>, transform_indices = @transform_3, window_bounds = array<i64: 4, 16>}, {pipeline_mode = #tpu.pipeline_mode<synchronous>, transform_indices = @transform_4, window_bounds = array<i64: 1, 16>}, {transform_indices = @transform_5, window_bounds = array<i64: 2, 256, 16>}]} {
    %c0 = arith.constant 0 : index
    %c0_0 = arith.constant 0 : index
    %c0_1 = arith.constant 0 : index
    %0 = vector.load %arg1[%c0, %c0_0, %c0_1] : memref<2x256x16xf32, #tpu.memory_space<vmem>>, vector<2x256x16xf32>
    %cst = arith.constant dense<0.000000e+00> : vector<2x16xf32>
    %1 = vector.multi_reduction <add>, %0, %cst [1] : vector<2x256x16xf32> to vector<2x16xf32>
    %cst_2 = arith.constant 2.560000e+02 : f32
    %2 = vector.broadcast %cst_2 : f32 to vector<2x16xf32>
    %3 = arith.divf %1, %2 : vector<2x16xf32>
    %c0_3 = arith.constant 0 : index
    %c0_4 = arith.constant 0 : index
    %4 = vector.load %arg2[%c0_3, %c0_4] : memref<16x4xf32, #tpu.memory_space<vmem>>, vector<16x4xf32>
    %cst_5 = arith.constant dense<0.000000e+00> : vector<2x4xf32>
    %5 = tpu.matmul %3, %4, %cst_5 {dimension_numbers = #tpu.dot_dimension_numbers<[1], [0], [0], [1], [0, 0, 1, 1], [], []>} : vector<2x16xf32>, vector<16x4xf32>, vector<2x4xf32> -> vector<2x4xf32>
    %c0_6 = arith.constant 0 : index
    %c0_7 = arith.constant 0 : index
    %6 = vector.load %arg3[%c0_6, %c0_7] : memref<1x4xf32, #tpu.memory_space<vmem>>, vector<1x4xf32>
    %7 = vector.broadcast %6 : vector<1x4xf32> to vector<2x4xf32>
    %8 = arith.addf %5, %7 : vector<2x4xf32>
    %cst_8 = arith.constant 0.000000e+00 : f32
    %9 = vector.broadcast %cst_8 : f32 to vector<2x4xf32>
    %10 = arith.maximumf %8, %9 : vector<2x4xf32>
    %c0_9 = arith.constant 0 : index
    %c0_10 = arith.constant 0 : index
    %11 = vector.load %arg4[%c0_9, %c0_10] : memref<4x16xf32, #tpu.memory_space<vmem>>, vector<4x16xf32>
    %cst_11 = arith.constant dense<0.000000e+00> : vector<2x16xf32>
    %12 = tpu.matmul %10, %11, %cst_11 {dimension_numbers = #tpu.dot_dimension_numbers<[1], [0], [0], [1], [0, 0, 1, 1], [], []>} : vector<2x4xf32>, vector<4x16xf32>, vector<2x16xf32> -> vector<2x16xf32>
    %c0_12 = arith.constant 0 : index
    %c0_13 = arith.constant 0 : index
    %13 = vector.load %arg5[%c0_12, %c0_13] : memref<1x16xf32, #tpu.memory_space<vmem>>, vector<1x16xf32>
    %14 = vector.broadcast %13 : vector<1x16xf32> to vector<2x16xf32>
    %15 = arith.addf %12, %14 : vector<2x16xf32>
    %16 = arith.negf %15 : vector<2x16xf32>
    %17 = math.exp %16 : vector<2x16xf32>
    %cst_14 = arith.constant 1.000000e+00 : f32
    %18 = vector.broadcast %cst_14 : f32 to vector<2x16xf32>
    %19 = arith.addf %18, %17 : vector<2x16xf32>
    %20 = arith.divf %18, %19 : vector<2x16xf32>
    %21 = vector.shape_cast %20 : vector<2x16xf32> to vector<2x1x16xf32>
    %22 = vector.broadcast %21 : vector<2x1x16xf32> to vector<2x256x16xf32>
    %23 = arith.mulf %0, %22 : vector<2x256x16xf32>
    %c0_15 = arith.constant 0 : index
    %c0_16 = arith.constant 0 : index
    %c0_17 = arith.constant 0 : index
    %24 = vector.load %arg6[%c0_15, %c0_16, %c0_17] : memref<2x256x16xf32, #tpu.memory_space<vmem>>, vector<2x256x16xf32>
    tpu.vector_store %arg6[%c0_15, %c0_16, %c0_17], %23 {strides = array<i32>} : memref<2x256x16xf32, #tpu.memory_space<vmem>>, vector<2x256x16xf32>,
    return
  }
  func.func @transform_0(%arg0: i32) -> (i32, i32, i32) {
    %c0_i32 = arith.constant 0 : i32
    %c0_i32_0 = arith.constant 0 : i32
    %c0_i32_1 = arith.constant 0 : i32
    return %arg0, %c0_i32, %c0_i32_0 : i32, i32, i32
  }
  func.func @transform_1(%arg0: i32) -> (i32, i32) {
    %c0_i32 = arith.constant 0 : i32
    %c0_i32_0 = arith.constant 0 : i32
    %c0_i32_1 = arith.constant 0 : i32
    return %c0_i32, %c0_i32_0 : i32, i32
  }
  func.func @transform_2(%arg0: i32) -> (i32, i32) {
    %c0_i32 = arith.constant 0 : i32
    %c0_i32_0 = arith.constant 0 : i32
    %c0_i32_1 = arith.constant 0 : i32
    return %c0_i32, %c0_i32_0 : i32, i32
  }
  func.func @transform_3(%arg0: i32) -> (i32, i32) {
    %c0_i32 = arith.constant 0 : i32
    %c0_i32_0 = arith.constant 0 : i32
    %c0_i32_1 = arith.constant 0 : i32
    return %c0_i32, %c0_i32_0 : i32, i32
  }
  func.func @transform_4(%arg0: i32) -> (i32, i32) {
    %c0_i32 = arith.constant 0 : i32
    %c0_i32_0 = arith.constant 0 : i32
    %c0_i32_1 = arith.constant 0 : i32
    return %c0_i32, %c0_i32_0 : i32, i32
  }
  func.func @transform_5(%arg0: i32) -> (i32, i32, i32) {
    %c0_i32 = arith.constant 0 : i32
    %c0_i32_0 = arith.constant 0 : i32
    %c0_i32_1 = arith.constant 0 : i32
    return %arg0, %c0_i32, %c0_i32_0 : i32, i32, i32
  }
}

</mosaic_0001>

<bundles_post_ra>
// kernel: tpu_custom_call.1
= control target key start
LH: loop header
LB: loop body
LE: loop exit
PB: predicated region body
PF: predicated region fallthrough
CT: control target
= control target key end

     0   :  { %vm84_vm0 = vcmask 130048   ;;  %vm240_vm2 = vcmask 1041409   ;;  %vm274_vm3 = vcmask 1043456   ;;  %vm270_vm4 = vcmask 31744   ;;  %s1317_s1 = inlined_call_operand.vmem [shape: f32[16,4], index: 1, kind: input, shape index: {}]   ;;  %s1318_s0 = inlined_call_operand.vmem [shape: f32[2,256,16], index: 0, kind: input, shape index: {}]   ;;  %s1319_s2 = inlined_call_operand.vmem [shape: f32[1,4], index: 2, kind: input, shape index: {}]   ;;  %s1320_s4 = inlined_call_operand.vmem [shape: f32[1,16], index: 4, kind: input, shape index: {}]   ;;  %s1321_s3 = inlined_call_operand.vmem [shape: f32[4,16], index: 3, kind: input, shape index: {}]   ;;  %s1322_s5 = inlined_call_operand.vmem [shape: f32[2,256,16], index: 5, kind: output, shape index: {}]  }
   0x1   :  { %v233_v0 = vld [vmem:[%s1317_s1 + $0x8] sm:$0xff]  ;;  %v232_v1 = vld [vmem:[%s1317_s1] sm:$0xff]  ;;  %v518_v4 = vld [vmem:[%s1318_s0 + $0x10] sm:$0xff] }
   0x2   :  { %v508_v2 = vld [vmem:[%s1318_s0] sm:$0xff]  ;;  %258 = vmatpush.msra.mxu0 %v233_v0  ;;  %v513_v3 = vld [vmem:[%s1318_s0 + $0x8] sm:$0xff]  ;;  %v523_v5 = vld [vmem:[%s1318_s0 + $0x18] sm:$0xff]  ;;  %v88_v8 = vsel %vm84_vm0, %v518_v4, 0.0 }
   0x3   :  { %v85_v6 = vsel %vm84_vm0, %v508_v2, 0.0  ;;  %v86_v7 = vsel %vm84_vm0, %v513_v3, 0.0  ;;  %v534_v9 = vld [vmem:[%s1318_s0 + $0x20] sm:$0xff]  ;;  %v90_v11 = vsel %vm84_vm0, %v523_v5, 0.0  ;;  %v541_v12 = vld [vmem:[%s1318_s0 + $0x28] sm:$0xff]  ;;  %v548_v15 = vld [vmem:[%s1318_s0 + $0x30] sm:$0xff] }
   0x4   :  { %259 = vmatpush.msra.mxu0 %v232_v1  ;;  %v87_v10 = vadd.f32 %v86_v7, %v85_v6  ;;  %v92_v14 = vsel %vm84_vm0, %v534_v9, 0.0  ;;  %v94_v17 = vsel %vm84_vm0, %v541_v12, 0.0  ;;  %v555_v18 = vld [vmem:[%s1318_s0 + $0x38] sm:$0xff]  ;;  %v96_v20 = vsel %vm84_vm0, %v548_v15, 0.0  ;;  %v562_v21 = vld [vmem:[%s1318_s0 + $0x40] sm:$0xff]  ;;  %v572_v23 = vld [vmem:[%s1318_s0 + $0x108] sm:$0xff] }
   0x5   :  { %v567_v22 = vld [vmem:[%s1318_s0 + $0x100] sm:$0xff]  ;;  %v577_v25 = vld [vmem:[%s1318_s0 + $0x110] sm:$0xff]  ;;  %v582_v26 = vld [vmem:[%s1318_s0 + $0x118] sm:$0xff]  ;;  %v98_v27 = vsel %vm84_vm0, %v555_v18, 0.0  ;;  %v155_v29 = vsel %vm84_vm0, %v572_v23, 0.0  ;;  %v100_v35 = vsel %vm84_vm0, %v562_v21, 0.0 }
   0x6   :  { %v89_v13 = vadd.f32 %v88_v8, %v87_v10  ;;  %v154_v28 = vsel %vm84_vm0, %v567_v22, 0.0  ;;  %v593_v30 = vld [vmem:[%s1318_s0 + $0x48] sm:$0xff]  ;;  %v598_v31 = vld [vmem:[%s1318_s0 + $0x120] sm:$0xff]  ;;  %v157_v34 = vsel %vm84_vm0, %v577_v25, 0.0  ;;  %v159_v36 = vsel %vm84_vm0, %v582_v26, 0.0  ;;  %v609_v37 = vld [vmem:[%s1318_s0 + $0x50] sm:$0xff] }
   0x7   :  { %v156_v33 = vadd.f32 %v155_v29, %v154_v28  ;;  %v614_v38 = vld [vmem:[%s1318_s0 + $0x128] sm:$0xff]  ;;  %v102_v41 = vsel %vm84_vm0, %v593_v30, 0.0  ;;  %v161_v42 = vsel %vm84_vm0, %v598_v31, 0.0  ;;  %v623_v43 = vld [vmem:[%s1318_s0 + $0x58] sm:$0xff]  ;;  %v628_v44 = vld [vmem:[%s1318_s0 + $0x130] sm:$0xff]  ;;  %v104_v47 = vsel %vm84_vm0, %v609_v37, 0.0 }
   0x8   :  { %v91_v16 = vadd.f32 %v90_v11, %v89_v13  ;;  %v163_v48 = vsel %vm84_vm0, %v614_v38, 0.0  ;;  %v637_v49 = vld [vmem:[%s1318_s0 + $0x60] sm:$0xff]  ;;  %v642_v50 = vld [vmem:[%s1318_s0 + $0x138] sm:$0xff]  ;;  %v106_v53 = vsel %vm84_vm0, %v623_v43, 0.0  ;;  %v165_v54 = vsel %vm84_vm0, %v628_v44, 0.0  ;;  %v651_v55 = vld [vmem:[%s1318_s0 + $0x68] sm:$0xff] }
   0x9   :  { %v158_v40 = vadd.f32 %v157_v34, %v156_v33  ;;  %1348 = vst [vmem:[#allocation2_spill] sm:$0xff] %v642_v50  ;;  %v656_v56 = vld [vmem:[%s1318_s0 + $0x140] sm:$0xff]  ;;  %v108_v59 = vsel %vm84_vm0, %v637_v49, 0.0  ;;  %v167_v60 = vsel %vm84_vm0, %v642_v50, 0.0  ;;  %v665_v61 = vld [vmem:[%s1318_s0 + $0x70] sm:$0xff]  ;;  %v670_v62 = vld [vmem:[%s1318_s0 + $0x148] sm:$0xff] }
   0xa   :  { %v93_v19 = vadd.f32 %v92_v14, %v91_v16  ;;  %1349 = vst [vmem:[#allocation3_spill] sm:$0xff] %v656_v56  ;;  %v110_v1 = vsel %vm84_vm0, %v651_v55, 0.0  ;;  %v169_v6 = vsel %vm84_vm0, %v656_v56, 0.0  ;;  %v679_v7 = vld [vmem:[%s1318_s0 + $0x78] sm:$0xff]  ;;  %v684_v8 = vld [vmem:[%s1318_s0 + $0x150] sm:$0xff]  ;;  %v112_v13 = vsel %vm84_vm0, %v665_v61, 0.0 }
   0xb   :  { %v160_v46 = vadd.f32 %v159_v36, %v158_v40  ;;  %1350 = vst [vmem:[#allocation4_spill] sm:$0xff] %v670_v62  ;;  %v171_v14 = vsel %vm84_vm0, %v670_v62, 0.0  ;;  %v693_v16 = vld [vmem:[%s1318_s0 + $0x80] sm:$0xff]  ;;  %v707_v28 = vld [vmem:[%s1318_s0 + $0x88] sm:$0xff]  ;;  %v721_v36 = vld [vmem:[%s1318_s0 + $0x90] sm:$0xff] }
   0xc   :  { %v95_v24 = vadd.f32 %v94_v17, %v93_v19  ;;  %1351 = vst [vmem:[#allocation5_spill] sm:$0xff] %v684_v8  ;;  %v698_v17 = vld [vmem:[%s1318_s0 + $0x158] sm:$0xff]  ;;  %v712_v29 = vld [vmem:[%s1318_s0 + $0x160] sm:$0xff]  ;;  %v116_v34 = vsel %vm84_vm0, %v693_v16, 0.0 }
   0xd   :  { %v162_v52 = vadd.f32 %v161_v42, %v160_v46  ;;  %1352 = vst [vmem:[#allocation6_spill] sm:$0xff] %v698_v17  ;;  %v118_v42 = vsel %vm84_vm0, %v707_v28, 0.0  ;;  %v735_v46 = vld [vmem:[%s1318_s0 + $0x98] sm:$0xff] }
   0xe   :  { %v97_v32 = vadd.f32 %v96_v20, %v95_v24  ;;  %v114_v24 = vsel %vm84_vm0, %v679_v7, 0.0  ;;  %1353 = vst [vmem:[#allocation7_spill] sm:$0xff] %v712_v29 }
   0xf   :  { %v164_v58 = vadd.f32 %v163_v48, %v162_v52  ;;  %v120_v52 = vsel %vm84_vm0, %v721_v36, 0.0 }
  0x10   :  { %v99_v39 = vadd.f32 %v98_v27, %v97_v32  ;;  %v173_v27 = vsel %vm84_vm0, %v684_v8, 0.0 }
  0x11   :  { %v166_v0 = vadd.f32 %v165_v54, %v164_v58  ;;  %v749_v54 = vld [vmem:[%s1318_s0 + $0xa0] sm:$0xff] }
  0x12   :  { %v101_v45 = vadd.f32 %v100_v35, %v99_v39  ;;  %v175_v35 = vsel %vm84_vm0, %v698_v17, 0.0  ;;  %v726_v39 = vld [vmem:[%s1318_s0 + $0x168] sm:$0xff] }
  0x13   :  { %v168_v11 = vadd.f32 %v167_v60, %v166_v0  ;;  %1354 = vst [vmem:[#allocation8_spill] sm:$0xff] %v726_v39  ;;  %v122_v60 = vsel %vm84_vm0, %v735_v46, 0.0  ;;  %v763_v0 = vld [vmem:[%s1318_s0 + $0xa8] sm:$0xff] }
  0x14   :  { %v103_v51 = vadd.f32 %v102_v41, %v101_v45  ;;  %v177_v45 = vsel %vm84_vm0, %v712_v29, 0.0 }
  0x15   :  { %v170_v20 = vadd.f32 %v169_v6, %v168_v11  ;;  %v124_v11 = vsel %vm84_vm0, %v749_v54, 0.0 }
  0x16   :  { %v105_v57 = vadd.f32 %v104_v47, %v103_v51  ;;  %v740_v47 = vld [vmem:[%s1318_s0 + $0x170] sm:$0xff] }
  0x17   :  { %v172_v33 = vadd.f32 %v171_v14, %v170_v20  ;;  %1355 = vst [vmem:[#allocation9_spill] sm:$0xff] %v740_v47  ;;  %v777_v14 = vld [vmem:[%s1318_s0 + $0xb0] sm:$0xff] }
  0x18   :  { %v107_v63 = vadd.f32 %v106_v53, %v105_v57  ;;  %v179_v53 = vsel %vm84_vm0, %v726_v39, 0.0  ;;  %v754_v57 = vld [vmem:[%s1318_s0 + $0x178] sm:$0xff] }
  0x19   :  { %v174_v41 = vadd.f32 %v173_v27, %v172_v33  ;;  %1356 = vst [vmem:[#allocation10_spill] sm:$0xff] %v754_v57  ;;  %v126_v27 = vsel %vm84_vm0, %v763_v0, 0.0  ;;  %v791_v33 = vld [vmem:[%s1318_s0 + $0xb8] sm:$0xff] }
  0x1a   :  { %v109_v10 = vadd.f32 %v108_v59, %v107_v63  ;;  %v181_v63 = vsel %vm84_vm0, %v740_v47, 0.0 }
  0x1b   :  { %v176_v51 = vadd.f32 %v175_v35, %v174_v41  ;;  %v128_v41 = vsel %vm84_vm0, %v777_v14, 0.0 }
  0x1c   :  { %v111_v19 = vadd.f32 %v110_v1, %v109_v10  ;;  %v768_v1 = vld [vmem:[%s1318_s0 + $0x180] sm:$0xff] }
  0x1d   :  { %v178_v59 = vadd.f32 %v177_v45, %v176_v51  ;;  %1357 = vst [vmem:[#allocation11_spill] sm:$0xff] %v768_v1  ;;  %v805_v45 = vld [vmem:[%s1318_s0 + $0xc0] sm:$0xff] }
  0x1e   :  { %v113_v32 = vadd.f32 %v112_v13, %v111_v19  ;;  %v183_v13 = vsel %vm84_vm0, %v754_v57, 0.0  ;;  %v782_v19 = vld [vmem:[%s1318_s0 + $0x188] sm:$0xff] }
  0x1f   :  { %v180_v10 = vadd.f32 %v179_v53, %v178_v59  ;;  %1358 = vst [vmem:[#allocation12_spill] sm:$0xff] %v782_v19  ;;  %v130_v53 = vsel %vm84_vm0, %v791_v33, 0.0  ;;  %v819_v59 = vld [vmem:[%s1318_s0 + $0xc8] sm:$0xff] }
  0x20   :  { %v115_v40 = vadd.f32 %v114_v24, %v113_v32  ;;  %v185_v32 = vsel %vm84_vm0, %v768_v1, 0.0 }
  0x21   :  { %v182_v24 = vadd.f32 %v181_v63, %v180_v10  ;;  %v132_v10 = vsel %vm84_vm0, %v805_v45, 0.0 }
  0x22   :  { %v117_v48 = vadd.f32 %v116_v34, %v115_v40  ;;  %v796_v34 = vld [vmem:[%s1318_s0 + $0x190] sm:$0xff] }
  0x23   :  { %1359 = vst [vmem:[#allocation13_spill] sm:$0xff] %v796_v34  ;;  %v184_v40 = vadd.f32 %v183_v13, %v182_v24  ;;  %v833_v13 = vld [vmem:[%s1318_s0 + $0xd0] sm:$0xff] }
  0x24   :  { %v119_v58 = vadd.f32 %v118_v42, %v117_v48  ;;  %v187_v42 = vsel %vm84_vm0, %v782_v19, 0.0  ;;  %v810_v48 = vld [vmem:[%s1318_s0 + $0x198] sm:$0xff] }
  0x25   :  { %1360 = vst [vmem:[#allocation14_spill] sm:$0xff] %v810_v48 }
  0x26   :  { %v121_v6 = vadd.f32 %v120_v52, %v119_v58  ;;  %v186_v52 = vadd.f32 %v185_v32, %v184_v40  ;;  %v189_v58 = vsel %vm84_vm0, %v796_v34, 0.0  ;;  %v134_v32 = vsel %vm84_vm0, %v819_v59, 0.0  ;;  %v847_v40 = vld [vmem:[%s1318_s0 + $0xd8] sm:$0xff] }
  0x28   :  { %v123_v20 = vadd.f32 %v122_v60, %v121_v6  ;;  %v824_v60 = vld [vmem:[%s1318_s0 + $0x1a0] sm:$0xff]  ;;  %v188_v6 = vadd.f32 %v187_v42, %v186_v52  ;;  %v136_v52 = vsel %vm84_vm0, %v833_v13, 0.0 }
  0x29   :  { %1361 = vst [vmem:[#allocation15_spill] sm:$0xff] %v824_v60 }
  0x2a   :  { %v125_v35 = vadd.f32 %v124_v11, %v123_v20  ;;  %v191_v11 = vsel %vm84_vm0, %v810_v48, 0.0  ;;  %v838_v20 = vld [vmem:[%s1318_s0 + $0x1a8] sm:$0xff] }
  0x2b   :  { %1362 = vst [vmem:[#allocation16_spill] sm:$0xff] %v838_v20 }
  0x2c   :  { %v127_v51 = vadd.f32 %v126_v27, %v125_v35  ;;  %v190_v27 = vadd.f32 %v189_v58, %v188_v6  ;;  %v193_v35 = vsel %vm84_vm0, %v824_v60, 0.0  ;;  %v861_v58 = vld [vmem:[%s1318_s0 + $0xe0] sm:$0xff] }
  0x2e   :  { %v129_v63 = vadd.f32 %v128_v41, %v127_v51  ;;  %v852_v41 = vld [vmem:[%s1318_s0 + $0x1b0] sm:$0xff]  ;;  %v192_v51 = vadd.f32 %v191_v11, %v190_v27  ;;  %v880_v27 = vld [vmem:[%s1318_s0 + $0x1c0] sm:$0xff] }
  0x2f   :  { %1363 = vst [vmem:[#allocation17_spill] sm:$0xff] %v852_v41  ;;  %v197_v11 = vsel %vm84_vm0, %v852_v41, 0.0 }
  0x30   :  { %v131_v24 = vadd.f32 %v130_v53, %v129_v63  ;;  %v195_v53 = vsel %vm84_vm0, %v838_v20, 0.0  ;;  %v866_v63 = vld [vmem:[%s1318_s0 + $0x1b8] sm:$0xff]  ;;  %v194_v60 = vadd.f32 %v193_v35, %v192_v51  ;;  %1365 = vst [vmem:[#allocation19_spill] sm:$0xff] %v880_v27  ;;  %v894_v51 = vld [vmem:[%s1318_s0 + $0x1c8] sm:$0xff] }
  0x31   :  { %1364 = vst [vmem:[#allocation18_spill] sm:$0xff] %v866_v63  ;;  %v199_v35 = vsel %vm84_vm0, %v866_v63, 0.0 }
  0x32   :  { %v133_v42 = vadd.f32 %v132_v10, %v131_v24  ;;  %v138_v10 = vsel %vm84_vm0, %v847_v40, 0.0  ;;  %v875_v24 = vld [vmem:[%s1318_s0 + $0xe8] sm:$0xff]  ;;  %v196_v48 = vadd.f32 %v195_v53, %v194_v60  ;;  %1366 = vst [vmem:[#allocation20_spill] sm:$0xff] %v894_v51  ;;  %v903_v53 = vld [vmem:[%s1318_s0 + $0xf8] sm:$0xff] }
  0x33   :  { %v142_v60 = vsel %vm84_vm0, %v875_v24, 0.0  ;;  %v146_v57 = vsel %vm84_vm0, %v903_v53, 0.0 }
  0x34   :  { %v135_v6 = vadd.f32 %v134_v32, %v133_v42  ;;  %v140_v32 = vsel %vm84_vm0, %v861_v58, 0.0  ;;  %v889_v42 = vld [vmem:[%s1318_s0 + $0xf0] sm:$0xff]  ;;  %v198_v34 = vadd.f32 %v197_v11, %v196_v48  ;;  %v917_v11 = vld [vmem:[%s1318_s0 + $0x1d8] sm:$0xff] }
  0x35   :  { %v144_v48 = vsel %vm84_vm0, %v889_v42, 0.0  ;;  %1368 = vst [vmem:[#allocation22_spill] sm:$0xff] %v917_v11 }
  0x36   :  { %v137_v20 = vadd.f32 %v136_v52, %v135_v6  ;;  %v201_v52 = vsel %vm84_vm0, %v880_v27, 0.0  ;;  %v908_v6 = vld [vmem:[%s1318_s0 + $0x1d0] sm:$0xff]  ;;  %v200_v19 = vadd.f32 %v199_v35, %v198_v34 }
  0x37   :  { %1367 = vst [vmem:[#allocation21_spill] sm:$0xff] %v908_v6  ;;  %v205_v34 = vsel %vm84_vm0, %v908_v6, 0.0  ;;  %v940_v6 = vld [vmem:[%s1318_s0 + $0x1f0] sm:$0xff] }
  0x38   :  { %v139_v41 = vadd.f32 %v138_v10, %v137_v20  ;;  %v468_v20 = vmov 256.0   ;;  %v203_v10 = vsel %vm84_vm0, %v894_v51, 0.0  ;;  %v202_v1 = vadd.f32 %v201_v52, %v200_v19  ;;  %v933_v19 = vld [vmem:[%s1318_s0 + $0x1e8] sm:$0xff]  ;;  %1371 = vst [vmem:[#allocation25_spill] sm:$0xff] %v940_v6 }
  0x39   :  { %462 = vrcp.f32 %v468_v20  ;;  %v207_v20 = vsel %vm84_vm0, %v917_v11, 0.0  ;;  %1370 = vst [vmem:[#allocation24_spill] sm:$0xff] %v933_v19  ;;  %v947_v11 = vld [vmem:[%s1318_s0 + $0x1f8] sm:$0xff] }
  0x3a   :  { %v141_v63 = vadd.f32 %v140_v32, %v139_v41  ;;  %v926_v41 = vld [vmem:[%s1318_s0 + $0x1e0] sm:$0xff]  ;;  %v204_v35 = vadd.f32 %v203_v10, %v202_v1  ;;  %1372 = vst [vmem:[#allocation26_spill] sm:$0xff] %v947_v11  ;;  %v215_v47 = vsel %vm84_vm0, %v947_v11, 0.0 }
  0x3b   :  { %1369 = vst [vmem:[#allocation23_spill] sm:$0xff] %v926_v41  ;;  %v209_v52 = vsel %vm84_vm0, %v926_v41, 0.0 }
  0x3c   :  { %v143_v27 = vadd.f32 %v142_v60, %v141_v63  ;;  %v206_v60 = vadd.f32 %v205_v34, %v204_v35 }
  0x3e   :  { %v145_v32 = vadd.f32 %v144_v48, %v143_v27  ;;  %v208_v27 = vadd.f32 %v207_v20, %v206_v60  ;;  %v211_v48 = vsel %vm84_vm0, %v933_v19, 0.0 }
  0x3f   :  { %v463_v51 = vpop.eup %462 }
  0x40   :  { %v147_v63 = vadd.f32 %v146_v57, %v145_v32  ;;  %v224_v10 = vmul.f32 256.0, %v463_v51  ;;  %v210_v34 = vadd.f32 %v209_v52, %v208_v27  ;;  %v213_v32 = vsel %vm84_vm0, %v940_v6, 0.0 }
  0x41   :  { %vm228_vm1 = vweird.f32 %v463_v51 }
  0x42   :  { %v148_v1 = vrot.slane %v147_v63, 4  ;;  %v212_v41 = vadd.f32 %v211_v48, %v210_v34  ;;  %v225_v20 = vsub.f32 1.0, %v224_v10 }
  0x44   :  { %v149_v57 = vadd.f32 %v148_v1, %v147_v63  ;;  %v214_v60 = vadd.f32 %v213_v32, %v212_v41  ;;  %v226_v29 = vmul.f32 %v463_v51, %v225_v20 }
  0x46   :  { %v150_v35 = vrot.slane %v149_v57, 2  ;;  %v216_v19 = vadd.f32 %v215_v47, %v214_v60  ;;  %v227_v56 = vadd.f32 %v463_v51, %v226_v29  ;;  %v265_v47 = vld [vmem:[%s1321_s3] sm:$0xf] }
  0x47   :  { %456 = vmatpush.msk.msra.mxu1 %vm274_vm3, %v265_v47 }
  0x48   :  { %v151_v39 = vadd.f32 %v150_v35, %v149_v57  ;;  %v217_v17 = vrot.slane %v216_v19, 4  ;;  %v229_v1 = vsel %vm228_vm1, %v463_v51, %v227_v56 }
  0x4a   :  { %v152_v8 = vrot.slane %v151_v39, 1  ;;  %v218_v62 = vadd.f32 %v217_v17, %v216_v19  ;;  %v461_v17 = vld [vmem:[%s1320_s4] ss:$0 sm:$0xff] }
  0x4c   :  { %v219_v50 = vrot.slane %v218_v62, 2  ;;  %v153_v63 = vadd.f32 %v152_v8, %v151_v39  ;;  %v460_v8 = vld [vmem:[%s1319_s2] ss:$0 sm:$0xff] }
  0x4e   :  { %v220_v52 = vadd.f32 %v219_v50, %v218_v62  ;;  %v230_v48 = vmul.f32 %v229_v1, %v153_v63 }
  0x50   :  { %v221_v27 = vrot.slane %v220_v52, 1 }
  0x52   :  { %v222_v6 = vadd.f32 %v221_v27, %v220_v52 }
  0x54   :  { %v231_v34 = vmul.f32 %v229_v1, %v222_v6 }
  0x56   :  { %v241_v11 = vsel %vm240_vm2, %v231_v34, %v230_v48 }
  0x57   :  { %455 = vmatmul.msk.f32.vlgmr.msra.gmra.mxu0 %vm84_vm0, %v241_v11 }
  0xd4   :  { %v261_v50 = vpop.f32.mrf.mxu0 }
  0xd5   :  { %v262_v56 = vadd.f32 %v460_v8, %v261_v50 }
  0xd7   :  { %v264_v62 = vmax.f32 %v262_v56, 0.0 }
  0xd9   :  { %457 = vmatmul.msk.f32.vlgmr.msra.gmra.mxu1 %vm270_vm4, %v264_v62 }
 0x156   :  { %v295_v29 = vpop.f32.mrf.mxu1 }
 0x157   :  { %v296_v39 = vadd.f32 %v461_v17, %v295_v29  ;;  %v1376_v17 = vld [vmem:[#allocation5_spill] sm:$0xff] }
 0x159   :  { %v458_v51 = vmul.f32 -1.442695, %v296_v39  ;;  %v1377_v39 = vld [vmem:[#allocation6_spill] sm:$0xff] }
 0x15b   :  { %464 = vpow2.f32 %v458_v51 }
 0x161   :  { %v465_v6 = vpop.eup %464 }
 0x162   :  { %v301_v11 = vadd.f32 1.0, %v465_v6  ;;  %v1378_v6 = vld [vmem:[#allocation7_spill] sm:$0xff] }
 0x164   :  { %466 = vrcp.f32 %v301_v11  ;;  %v313_v57 = vand.u32 2147483648, %v301_v11  ;;  %v311_v35 = vand.u32 2147483647, %v301_v11  ;;  %vm307_vm6 = vweird.f32 %v301_v11 }
 0x166   :  { %v314_v60 = vor.u32 1.1754944e-38, %v313_v57  ;;  %vm312_vm8 = vcmp.eq.f32.partialorder %v311_v35, 8.507059e+37 }
 0x16a   :  { %v467_v41 = vpop.eup %466 }
 0x16b   :  { %v303_v19 = vmul.f32 %v467_v41, %v301_v11  ;;  %vm308_vm5 = vweird.f32 %v467_v41 }
 0x16c   :  { %vm309_vm7 = vmor %vm307_vm6, %vm308_vm5 }
 0x16d   :  { %v304_v10 = vsub.f32 1.0, %v303_v19 }
 0x16f   :  { %v305_v32 = vmul.f32 %v467_v41, %v304_v10  ;;  %v1380_v10 = vld [vmem:[#allocation9_spill] sm:$0xff] }
 0x171   :  { %v306_v20 = vadd.f32 %v467_v41, %v305_v32  ;;  %v1381_v32 = vld [vmem:[#allocation10_spill] sm:$0xff] }
 0x173   :  { %v310_v63 = vsel %vm309_vm7, %v467_v41, %v306_v20  ;;  %v1379_v41 = vld [vmem:[#allocation8_spill] sm:$0xff]  ;;  %v1382_v20 = vld [vmem:[#allocation11_spill] sm:$0xff] }
 0x174   :  { %v315_v52 = vsel %vm312_vm8, %v314_v60, %v310_v63  ;;  %v1383_v63 = vld [vmem:[#allocation12_spill] sm:$0xff] }
 0x175   :  { %v319_v1 = vperm.slane %v315_v52, 0 }
 0x177   :  { %v323_v27 = vmul.f32 %v319_v1, %v508_v2  ;;  %v324_v48 = vmul.f32 %v319_v1, %v513_v3  ;;  %v325_v34 = vmul.f32 %v319_v1, %v518_v4  ;;  %v326_v47 = vmul.f32 %v319_v1, %v523_v5 }
 0x178   :  { %v327_v8 = vmul.f32 %v319_v1, %v534_v9  ;;  %v328_v50 = vmul.f32 %v319_v1, %v541_v12  ;;  %v329_v2 = vmul.f32 %v319_v1, %v548_v15  ;;  %v330_v3 = vmul.f32 %v319_v1, %v555_v18 }
 0x179   :  { %387 = vst.msk [vmem:[%s1322_s5] sm:$0xff] %vm84_vm0, %v323_v27  ;;  %v331_v4 = vmul.f32 %v319_v1, %v562_v21  ;;  %v332_v5 = vmul.f32 %v319_v1, %v593_v30  ;;  %v333_v9 = vmul.f32 %v319_v1, %v609_v37  ;;  %v334_v12 = vmul.f32 %v319_v1, %v623_v43 }
 0x17a   :  { %388 = vst.msk [vmem:[%s1322_s5 + $0x8] sm:$0xff] %vm84_vm0, %v324_v48  ;;  %v335_v15 = vmul.f32 %v319_v1, %v637_v49  ;;  %v336_v18 = vmul.f32 %v319_v1, %v651_v55  ;;  %v337_v21 = vmul.f32 %v319_v1, %v665_v61  ;;  %v338_v30 = vmul.f32 %v319_v1, %v679_v7  ;;  %v1385_v48 = vld [vmem:[#allocation14_spill] sm:$0xff] }
 0x17b   :  { %389 = vst.msk [vmem:[%s1322_s5 + $0x10] sm:$0xff] %vm84_vm0, %v325_v34  ;;  %v339_v37 = vmul.f32 %v319_v1, %v693_v16  ;;  %v340_v43 = vmul.f32 %v319_v1, %v707_v28  ;;  %v341_v49 = vmul.f32 %v319_v1, %v721_v36  ;;  %v342_v55 = vmul.f32 %v319_v1, %v735_v46 }
 0x17c   :  { %390 = vst.msk [vmem:[%s1322_s5 + $0x18] sm:$0xff] %vm84_vm0, %v326_v47  ;;  %v343_v61 = vmul.f32 %v319_v1, %v749_v54  ;;  %v344_v7 = vmul.f32 %v319_v1, %v763_v0  ;;  %v345_v16 = vmul.f32 %v319_v1, %v777_v14  ;;  %v346_v28 = vmul.f32 %v319_v1, %v791_v33  ;;  %v1386_v47 = vld [vmem:[#allocation15_spill] sm:$0xff] }
 0x17d   :  { %391 = vst.msk [vmem:[%s1322_s5 + $0x20] sm:$0xff] %vm84_vm0, %v327_v8  ;;  %v318_v36 = vrot.slane %v315_v52, 1  ;;  %v347_v46 = vmul.f32 %v319_v1, %v805_v45  ;;  %v348_v54 = vmul.f32 %v319_v1, %v819_v59  ;;  %v349_v0 = vmul.f32 %v319_v1, %v833_v13 }
 0x17e   :  { %392 = vst.msk [vmem:[%s1322_s5 + $0x28] sm:$0xff] %vm84_vm0, %v328_v50  ;;  %v350_v14 = vmul.f32 %v319_v1, %v847_v40  ;;  %v351_v45 = vmul.f32 %v319_v1, %v861_v58  ;;  %v352_v59 = vmul.f32 %v319_v1, %v875_v24  ;;  %v353_v13 = vmul.f32 %v319_v1, %v889_v42  ;;  %v1387_v50 = vld [vmem:[#allocation16_spill] sm:$0xff] }
 0x17f   :  { %393 = vst.msk [vmem:[%s1322_s5 + $0x30] sm:$0xff] %vm84_vm0, %v329_v2  ;;  %v1087_v33 = vperm.slane %v318_v36, 0  ;;  %v354_v40 = vmul.f32 %v319_v1, %v903_v53  ;;  %v1384_v1 = vld [vmem:[#allocation13_spill] sm:$0xff] }
 0x180   :  { %394 = vst.msk [vmem:[%s1322_s5 + $0x38] sm:$0xff] %vm84_vm0, %v330_v3  ;;  %v1388_v3 = vld [vmem:[#allocation17_spill] sm:$0xff] }
 0x181   :  { %395 = vst.msk [vmem:[%s1322_s5 + $0x40] sm:$0xff] %vm84_vm0, %v331_v4  ;;  %v355_v58 = vmul.f32 %v1087_v33, %v567_v22  ;;  %v356_v24 = vmul.f32 %v1087_v33, %v572_v23  ;;  %v357_v42 = vmul.f32 %v1087_v33, %v577_v25  ;;  %v358_v22 = vmul.f32 %v1087_v33, %v582_v26 }
 0x182   :  { %396 = vst.msk [vmem:[%s1322_s5 + $0x48] sm:$0xff] %vm84_vm0, %v332_v5  ;;  %v359_v23 = vmul.f32 %v1087_v33, %v598_v31  ;;  %v360_v25 = vmul.f32 %v1087_v33, %v614_v38  ;;  %v361_v26 = vmul.f32 %v1087_v33, %v628_v44  ;;  %v1373_v31 = vld [vmem:[#allocation2_spill] sm:$0xff]  ;;  %v1374_v38 = vld [vmem:[#allocation3_spill] sm:$0xff]  ;;  %v1375_v44 = vld [vmem:[#allocation4_spill] sm:$0xff]  ;;  %v365_v29 = vmul.f32 %v1087_v33, %v1376_v17 }
 0x183   :  { %397 = vst.msk [vmem:[%s1322_s5 + $0x50] sm:$0xff] %vm84_vm0, %v333_v9  ;;  %v362_v53 = vmul.f32 %v1087_v33, %v1373_v31  ;;  %v363_v56 = vmul.f32 %v1087_v33, %v1374_v38  ;;  %v364_v62 = vmul.f32 %v1087_v33, %v1375_v44  ;;  %v366_v51 = vmul.f32 %v1087_v33, %v1377_v39  ;;  %v1389_v5 = vld [vmem:[#allocation18_spill] sm:$0xff] }
 0x184   :  { %398 = vst.msk [vmem:[%s1322_s5 + $0x58] sm:$0xff] %vm84_vm0, %v334_v12  ;;  %v367_v11 = vmul.f32 %v1087_v33, %v1378_v6  ;;  %v368_v19 = vmul.f32 %v1087_v33, %v1379_v41  ;;  %v369_v57 = vmul.f32 %v1087_v33, %v1380_v10  ;;  %v370_v35 = vmul.f32 %v1087_v33, %v1381_v32  ;;  %v1390_v12 = vld [vmem:[#allocation19_spill] sm:$0xff] }
 0x185   :  { %399 = vst.msk [vmem:[%s1322_s5 + $0x60] sm:$0xff] %vm84_vm0, %v335_v15  ;;  %v371_v60 = vmul.f32 %v1087_v33, %v1382_v20  ;;  %v372_v52 = vmul.f32 %v1087_v33, %v1383_v63  ;;  %v373_v27 = vmul.f32 %v1087_v33, %v1384_v1  ;;  %v374_v34 = vmul.f32 %v1087_v33, %v1385_v48 }
 0x186   :  { %400 = vst.msk [vmem:[%s1322_s5 + $0x68] sm:$0xff] %vm84_vm0, %v336_v18  ;;  %v375_v8 = vmul.f32 %v1087_v33, %v1386_v47  ;;  %v376_v2 = vmul.f32 %v1087_v33, %v1387_v50  ;;  %v377_v4 = vmul.f32 %v1087_v33, %v1388_v3  ;;  %v378_v9 = vmul.f32 %v1087_v33, %v1389_v5  ;;  %v1391_v18 = vld [vmem:[#allocation20_spill] sm:$0xff] }
 0x187   :  { %401 = vst.msk [vmem:[%s1322_s5 + $0x70] sm:$0xff] %vm84_vm0, %v337_v21  ;;  %v379_v15 = vmul.f32 %v1087_v33, %v1390_v12  ;;  %v380_v21 = vmul.f32 %v1087_v33, %v1391_v18 }
 0x188   :  { %402 = vst.msk [vmem:[%s1322_s5 + $0x78] sm:$0xff] %vm84_vm0, %v338_v30  ;;  %v1392_v30 = vld [vmem:[#allocation21_spill] sm:$0xff] }
 0x189   :  { %403 = vst.msk [vmem:[%s1322_s5 + $0x80] sm:$0xff] %vm84_vm0, %v339_v37  ;;  %v381_v37 = vmul.f32 %v1087_v33, %v1392_v30 }
 0x18a   :  { %404 = vst.msk [vmem:[%s1322_s5 + $0x88] sm:$0xff] %vm84_vm0, %v340_v43  ;;  %v1393_v43 = vld [vmem:[#allocation22_spill] sm:$0xff] }
 0x18b   :  { %405 = vst.msk [vmem:[%s1322_s5 + $0x90] sm:$0xff] %vm84_vm0, %v341_v49  ;;  %v382_v49 = vmul.f32 %v1087_v33, %v1393_v43 }
 0x18c   :  { %406 = vst.msk [vmem:[%s1322_s5 + $0x98] sm:$0xff] %vm84_vm0, %v342_v55  ;;  %v1394_v55 = vld [vmem:[#allocation23_spill] sm:$0xff] }
 0x18d   :  { %407 = vst.msk [vmem:[%s1322_s5 + $0xa0] sm:$0xff] %vm84_vm0, %v343_v61  ;;  %v383_v61 = vmul.f32 %v1087_v33, %v1394_v55 }
 0x18e   :  { %408 = vst.msk [vmem:[%s1322_s5 + $0xa8] sm:$0xff] %vm84_vm0, %v344_v7  ;;  %v1395_v7 = vld [vmem:[#allocation24_spill] sm:$0xff] }
 0x18f   :  { %409 = vst.msk [vmem:[%s1322_s5 + $0xb0] sm:$0xff] %vm84_vm0, %v345_v16  ;;  %v384_v16 = vmul.f32 %v1087_v33, %v1395_v7 }
 0x190   :  { %410 = vst.msk [vmem:[%s1322_s5 + $0xb8] sm:$0xff] %vm84_vm0, %v346_v28  ;;  %v1396_v28 = vld [vmem:[#allocation25_spill] sm:$0xff] }
 0x191   :  { %411 = vst.msk [vmem:[%s1322_s5 + $0xc0] sm:$0xff] %vm84_vm0, %v347_v46  ;;  %v385_v36 = vmul.f32 %v1087_v33, %v1396_v28  ;;  %v1397_v46 = vld [vmem:[#allocation26_spill] sm:$0xff] }
 0x192   :  { %412 = vst.msk [vmem:[%s1322_s5 + $0xc8] sm:$0xff] %vm84_vm0, %v348_v54  ;;  %v386_v54 = vmul.f32 %v1087_v33, %v1397_v46 }
 0x193   :  { %413 = vst.msk [vmem:[%s1322_s5 + $0xd0] sm:$0xff] %vm84_vm0, %v349_v0 }
 0x194   :  { %414 = vst.msk [vmem:[%s1322_s5 + $0xd8] sm:$0xff] %vm84_vm0, %v350_v14 }
 0x195   :  { %415 = vst.msk [vmem:[%s1322_s5 + $0xe0] sm:$0xff] %vm84_vm0, %v351_v45 }
 0x196   :  { %416 = vst.msk [vmem:[%s1322_s5 + $0xe8] sm:$0xff] %vm84_vm0, %v352_v59 }
 0x197   :  { %417 = vst.msk [vmem:[%s1322_s5 + $0xf0] sm:$0xff] %vm84_vm0, %v353_v13 }
 0x198   :  { %418 = vst.msk [vmem:[%s1322_s5 + $0xf8] sm:$0xff] %vm84_vm0, %v354_v40 }
 0x199   :  { %419 = vst.msk [vmem:[%s1322_s5 + $0x100] sm:$0xff] %vm84_vm0, %v355_v58 }
 0x19a   :  { %420 = vst.msk [vmem:[%s1322_s5 + $0x108] sm:$0xff] %vm84_vm0, %v356_v24 }
 0x19b   :  { %421 = vst.msk [vmem:[%s1322_s5 + $0x110] sm:$0xff] %vm84_vm0, %v357_v42 }
 0x19c   :  { %422 = vst.msk [vmem:[%s1322_s5 + $0x118] sm:$0xff] %vm84_vm0, %v358_v22 }
 0x19d   :  { %423 = vst.msk [vmem:[%s1322_s5 + $0x120] sm:$0xff] %vm84_vm0, %v359_v23 }
 0x19e   :  { %424 = vst.msk [vmem:[%s1322_s5 + $0x128] sm:$0xff] %vm84_vm0, %v360_v25 }
 0x19f   :  { %425 = vst.msk [vmem:[%s1322_s5 + $0x130] sm:$0xff] %vm84_vm0, %v361_v26 }
 0x1a0   :  { %426 = vst.msk [vmem:[%s1322_s5 + $0x138] sm:$0xff] %vm84_vm0, %v362_v53 }
 0x1a1   :  { %427 = vst.msk [vmem:[%s1322_s5 + $0x140] sm:$0xff] %vm84_vm0, %v363_v56 }
 0x1a2   :  { %428 = vst.msk [vmem:[%s1322_s5 + $0x148] sm:$0xff] %vm84_vm0, %v364_v62 }
 0x1a3   :  { %429 = vst.msk [vmem:[%s1322_s5 + $0x150] sm:$0xff] %vm84_vm0, %v365_v29 }
 0x1a4   :  { %430 = vst.msk [vmem:[%s1322_s5 + $0x158] sm:$0xff] %vm84_vm0, %v366_v51 }
 0x1a5   :  { %431 = vst.msk [vmem:[%s1322_s5 + $0x160] sm:$0xff] %vm84_vm0, %v367_v11 }
 0x1a6   :  { %432 = vst.msk [vmem:[%s1322_s5 + $0x168] sm:$0xff] %vm84_vm0, %v368_v19 }
 0x1a7   :  { %433 = vst.msk [vmem:[%s1322_s5 + $0x170] sm:$0xff] %vm84_vm0, %v369_v57 }
 0x1a8   :  { %434 = vst.msk [vmem:[%s1322_s5 + $0x178] sm:$0xff] %vm84_vm0, %v370_v35 }
 0x1a9   :  { %435 = vst.msk [vmem:[%s1322_s5 + $0x180] sm:$0xff] %vm84_vm0, %v371_v60 }
 0x1aa   :  { %436 = vst.msk [vmem:[%s1322_s5 + $0x188] sm:$0xff] %vm84_vm0, %v372_v52 }
 0x1ab   :  { %437 = vst.msk [vmem:[%s1322_s5 + $0x190] sm:$0xff] %vm84_vm0, %v373_v27 }
 0x1ac   :  { %438 = vst.msk [vmem:[%s1322_s5 + $0x198] sm:$0xff] %vm84_vm0, %v374_v34 }
 0x1ad   :  { %439 = vst.msk [vmem:[%s1322_s5 + $0x1a0] sm:$0xff] %vm84_vm0, %v375_v8 }
 0x1ae   :  { %440 = vst.msk [vmem:[%s1322_s5 + $0x1a8] sm:$0xff] %vm84_vm0, %v376_v2 }
 0x1af   :  { %441 = vst.msk [vmem:[%s1322_s5 + $0x1b0] sm:$0xff] %vm84_vm0, %v377_v4 }
 0x1b0   :  { %442 = vst.msk [vmem:[%s1322_s5 + $0x1b8] sm:$0xff] %vm84_vm0, %v378_v9 }
 0x1b1   :  { %443 = vst.msk [vmem:[%s1322_s5 + $0x1c0] sm:$0xff] %vm84_vm0, %v379_v15 }
 0x1b2   :  { %444 = vst.msk [vmem:[%s1322_s5 + $0x1c8] sm:$0xff] %vm84_vm0, %v380_v21 }
 0x1b3   :  { %445 = vst.msk [vmem:[%s1322_s5 + $0x1d0] sm:$0xff] %vm84_vm0, %v381_v37 }
 0x1b4   :  { %446 = vst.msk [vmem:[%s1322_s5 + $0x1d8] sm:$0xff] %vm84_vm0, %v382_v49 }
 0x1b5   :  { %447 = vst.msk [vmem:[%s1322_s5 + $0x1e0] sm:$0xff] %vm84_vm0, %v383_v61 }
 0x1b6   :  { %448 = vst.msk [vmem:[%s1322_s5 + $0x1e8] sm:$0xff] %vm84_vm0, %v384_v16 }
 0x1b7   :  { %449 = vst.msk [vmem:[%s1322_s5 + $0x1f0] sm:$0xff] %vm84_vm0, %v385_v36 }
 0x1b8   :  { %450 = vst.msk [vmem:[%s1322_s5 + $0x1f8] sm:$0xff] %vm84_vm0, %v386_v54 }

</bundles_post_ra>
